<compile_context>
chip_gen: v7x
topology: tpu7x:2x2x1
jax: 0.10.0
libtpu: 0.0.40
codegen_flags: <defaults>
</compile_context>

<pallas_src>
import functools

import numpy as np
import jax
import jax.numpy as jnp
from jax.experimental import pallas as pl
from jax.experimental.pallas import tpu as pltpu

HIDDEN = 256          # hidden_feature_channel in the torch module
BN_EPS = 1e-5
LANE = 128            # TPU lane width -> lane-dense channel padding
MAX_ROW_TILE = 256    # row tile when Hy*Wy is large (256-multiples fill v6e/v7x MXU)


def _round_up(x, m):
    return (x + m - 1) // m * m


# ---------------------------------------------------------------------------
# Bilinear interpolation as a dense matrix (exact F.interpolate: mode='bilinear',
# align_corners=False, no antialias).  Built in numpy once per shape combination
# and cached; the resize then becomes MXU work inside the fused kernel.
# ---------------------------------------------------------------------------
def _interp_matrix_np(in_size, out_size):
    i = np.arange(out_size, dtype=np.float64)
    src = np.maximum((i + 0.5) * (float(in_size) / float(out_size)) - 0.5, 0.0)
    i0 = np.clip(np.floor(src).astype(np.int64), 0, in_size - 1)
    i1 = np.minimum(i0 + 1, in_size - 1)
    frac = (src - i0).astype(np.float32)
    R = np.zeros((out_size, in_size), np.float32)
    rows = np.arange(out_size)
    R[rows, i0] += 1.0 - frac
    R[rows, i1] += frac
    return R


def _bilinear_matrix_np(in_hw, out_hw):
    Rh = _interp_matrix_np(in_hw[0], out_hw[0])
    Rw = _interp_matrix_np(in_hw[1], out_hw[1])
    return np.kron(Rh, Rw).astype(np.float32)          # (Ho*Wo, Hi*Wi)


@functools.lru_cache(maxsize=None)
def _cached_interp_matrix(in_hw, out_hw, r_pad):
    """Host numpy construction + H2D transfer done once per shape combo."""
    P = _bilinear_matrix_np(in_hw, out_hw)
    n_rows = out_hw[0] * out_hw[1]
    if r_pad > n_rows:
        # zero rows -> padded output rows are sliced off in the wrapper
        P = np.pad(P, ((0, r_pad - n_rows), (0, 0)))
    return jnp.asarray(P, dtype=jnp.bfloat16)


# ---------------------------------------------------------------------------
# Fused Pallas kernel.  For every aux layer k (static Python unroll):
#     xw_k = X_k @ W_k                 (1x1 conv applied pre-resize; lane-dense)
#     h_k  = relu(P_k @ xw_k + b_k)    (bilinear resize on MXU + folded BN + ReLU)
#     acc += h_k @ Wa_k                (k-th input-channel block of the agg conv)
# out = relu(acc + ba).T               (agg folded BN + ReLU), channel-major bf16
# (1x1 conv and bilinear resize are both linear and commute, so P@(X@W)==(P@X)@W.)
# ---------------------------------------------------------------------------
def _fused_kernel(num_aux, *refs):
    p_refs = refs[0:num_aux]
    x_refs = refs[num_aux:2 * num_aux]
    w_refs = refs[2 * num_aux:3 * num_aux]
    b_refs = refs[3 * num_aux:4 * num_aux]
    wa_refs = refs[4 * num_aux:5 * num_aux]
    ba_ref = refs[5 * num_aux]
    o_ref = refs[5 * num_aux + 1]
    acc_ref = refs[5 * num_aux + 2]                     # VMEM f32 scratch

    for k in range(num_aux):
        # 1x1 conv before resize: (HW_k, Cin_k) @ (Cin_k, HIDDEN) -> lane-dense
        xw = jnp.dot(x_refs[k][0], w_refs[k][...],
                     preferred_element_type=jnp.float32).astype(jnp.bfloat16)
        # bilinear resize on the MXU: (t_rows, HW_k) @ (HW_k, HIDDEN)
        h = jnp.dot(p_refs[k][...], xw, preferred_element_type=jnp.float32)
        # folded BN bias + ReLU in f32 (v5e has no bf16 VPU path)
        h = jnp.maximum(h + b_refs[k][...], 0.0).astype(jnp.bfloat16)
        # agg conv contribution for this aux's channel block: (HIDDEN, Cout_pad)
        contrib = jnp.dot(h, wa_refs[k][...], preferred_element_type=jnp.float32)
        if k == 0:
            acc_ref[...] = contrib
        else:
            acc_ref[...] += contrib

    out = jnp.maximum(acc_ref[...] + ba_ref[...], 0.0)   # (t_rows, Cout_pad) f32
    # channel-major bf16 output -> wrapper needs only slice+reshape for NCHW
    o_ref[0] = out.T.astype(o_ref.dtype)


def _vmem_limit_bytes(hw_list, cin_list, t_rows, cout_pad):
    """Rough double-buffered VMEM estimate, 2x margin, capped for v7x (64 MiB)."""
    est = 0
    for hw, ci in zip(hw_list, cin_list):
        est += 2 * t_rows * hw * 2                       # P block (bf16, 2 bufs)
        est += 2 * hw * max(ci, LANE) * 2                # X block (lane-padded)
        est += 2 * max(ci, 8) * HIDDEN * 2               # W
        est += 2 * 8 * HIDDEN * 4                        # b
        est += 2 * HIDDEN * cout_pad * 2                 # Wa
        est += hw * HIDDEN * 6 + t_rows * HIDDEN * 6     # in-kernel xw/h temps
    est += 2 * 8 * cout_pad * 4                          # ba
    est += 2 * cout_pad * t_rows * 2                     # output block (bf16)
    est += t_rows * cout_pad * 4                         # acc scratch
    return int(min(max(2 * est, 16 * 1024 * 1024), 48 * 1024 * 1024))


def _fused_forward_call(p_mats, x_flats, ws, bs, was, ba,
                        n, r_pad, t_rows, cout_pad, hw_list, cin_list):
    num_aux = len(p_mats)
    in_specs, inputs = [], []
    # grid = (row tiles outer, batch inner): P / weights blocks have constant
    # index across the inner batch axis -> DMA'd once, not once per batch elem.
    for p in p_mats:                                     # (r_pad, HW_k) bf16
        in_specs.append(pl.BlockSpec((t_rows, p.shape[1]),
                                     lambda ri, ni: (ri, 0)))
        inputs.append(p)
    for x in x_flats:                                    # (N, HW_k, Cin_k) bf16
        in_specs.append(pl.BlockSpec((1, x.shape[1], x.shape[2]),
                                     lambda ri, ni: (ni, 0, 0)))
        inputs.append(x)
    for w in ws:                                         # (Cin_k, HIDDEN) bf16
        in_specs.append(pl.BlockSpec((w.shape[0], w.shape[1]),
                                     lambda ri, ni: (0, 0)))
        inputs.append(w)
    for b in bs:                                         # (1, HIDDEN) f32
        in_specs.append(pl.BlockSpec((1, b.shape[1]), lambda ri, ni: (0, 0)))
        inputs.append(b)
    for wa in was:                                       # (HIDDEN, Cout_pad) bf16
        in_specs.append(pl.BlockSpec((wa.shape[0], wa.shape[1]),
                                     lambda ri, ni: (0, 0)))
        inputs.append(wa)
    in_specs.append(pl.BlockSpec((1, ba.shape[1]), lambda ri, ni: (0, 0)))
    inputs.append(ba)                                    # (1, Cout_pad) f32

    grid = (r_pad // t_rows, n)
    return pl.pallas_call(
        functools.partial(_fused_kernel, num_aux),
        out_shape=jax.ShapeDtypeStruct((n, cout_pad, r_pad), jnp.bfloat16),
        grid_spec=pltpu.PrefetchScalarGridSpec(
            num_scalar_prefetch=0,
            grid=grid,
            in_specs=in_specs,
            out_specs=pl.BlockSpec((1, cout_pad, t_rows),
                                   lambda ri, ni: (ni, 0, ri)),
            scratch_shapes=[pltpu.VMEM((t_rows, cout_pad), jnp.float32)],
        ),
        compiler_params=pltpu.CompilerParams(
            dimension_semantics=("parallel", "parallel"),
            vmem_limit_bytes=_vmem_limit_bytes(hw_list, cin_list,
                                               t_rows, cout_pad)),
    )(*inputs)


# ---------------------------------------------------------------------------
# Parameter construction + one-time BN folding (hoisted off the forward path)
# ---------------------------------------------------------------------------
def _make_conv_bn_params(key, c_in, c_out):
    kw, kb, kg, kbeta, km, kv = jax.random.split(key, 6)
    return dict(
        w=jax.random.normal(kw, (c_out, c_in), jnp.float32) * 0.05,
        b=jax.random.normal(kb, (c_out,), jnp.float32) * 0.05,
        gamma=1.0 + 0.1 * jax.random.normal(kg, (c_out,), jnp.float32),
        beta=0.1 * jax.random.normal(kbeta, (c_out,), jnp.float32),
        mean=0.1 * jax.random.normal(km, (c_out,), jnp.float32),
        var=jnp.abs(1.0 + 0.1 * jax.random.normal(kv, (c_out,), jnp.float32)),
    )


def _fold_bn(p):
    # eval-mode BatchNorm folded into the 1x1 conv
    scale = p["gamma"] / jnp.sqrt(p["var"] + BN_EPS)
    w_f = (p["w"] * scale[:, None]).T                    # (Cin, Cout)
    b_f = (p["b"] - p["mean"]) * scale + p["beta"]
    return w_f, b_f[None, :]


def init_cross_conv_layer(key, name, layer2channel, layer2auxlayers):
    aux_layers = layer2auxlayers[name]
    out_channel = layer2channel[name]
    params = {"convs": {}, "aux_layers": list(aux_layers),
              "out_channel": out_channel}
    keys = jax.random.split(key, len(aux_layers) + 1)
    for k, aux in zip(keys[:-1], aux_layers):
        params["convs"][aux] = _make_conv_bn_params(k, layer2channel[aux], HIDDEN)
    params["agg"] = _make_conv_bn_params(keys[-1], HIDDEN * len(aux_layers),
                                         out_channel)
    return params


def fold_params(params):
    """Fold BN once, cast MXU operands to bf16, pad agg output channels to a
    lane-dense multiple of 128, and split the agg weight into per-aux chunks
    ordered by sorted(aux_layers) (the same order the torch module concatenates)."""
    aux_sorted = sorted(params["aux_layers"])
    cout = int(params["out_channel"])
    cout_pad = _round_up(cout, LANE)

    wa_full, ba_full = _fold_bn(params["agg"])           # (HIDDEN*K, Cout), (1, Cout)
    wa_full = jnp.pad(wa_full, ((0, 0), (0, cout_pad - cout)))
    ba_full = jnp.pad(ba_full, ((0, 0), (0, cout_pad - cout)))

    folded = {"aux": [], "ba": ba_full.astype(jnp.float32),
              "cout": cout, "cout_pad": cout_pad}
    for k, name in enumerate(aux_sorted):
        w, b = _fold_bn(params["convs"][name])
        folded["aux"].append(dict(
            name=name,
            w=w.astype(jnp.bfloat16),                    # (Cin_k, HIDDEN)
            b=b.astype(jnp.float32),                     # (1, HIDDEN)
            wa=wa_full[k * HIDDEN:(k + 1) * HIDDEN].astype(jnp.bfloat16),
        ))
    return folded


# ---------------------------------------------------------------------------
# Forward (kernel_size=1, stride=1, padding=0 defaults -> pure matmuls)
# ---------------------------------------------------------------------------
def cross_conv_layer_forward(folded, x_dict, y, use_pooling=False):
    N = int(y.shape[0])
    Hy, Wy = int(y.shape[-2]), int(y.shape[-1])
    n_rows = Hy * Wy
    if n_rows > MAX_ROW_TILE:
        t_rows = MAX_ROW_TILE
        r_pad = _round_up(n_rows, t_rows)
    else:
        r_pad = _round_up(n_rows, 8)
        t_rows = r_pad
    cout, cout_pad = folded["cout"], folded["cout_pad"]

    p_mats, x_flats, ws, bs, was = [], [], [], [], []
    hw_list, cin_list = [], []
    for aux in folded["aux"]:
        xi = x_dict[aux["name"]]                                 # (N, Ci, Hi, Wi)
        _, Ci, Hi, Wi = (int(d) for d in xi.shape)
        p_mats.append(_cached_interp_matrix((Hi, Wi), (Hy, Wy), r_pad))
        x_flats.append(jnp.transpose(xi, (0, 2, 3, 1))
                       .reshape(N, Hi * Wi, Ci).astype(jnp.bfloat16))
        ws.append(aux["w"]); bs.append(aux["b"]); was.append(aux["wa"])
        hw_list.append(Hi * Wi); cin_list.append(Ci)

    out = _fused_forward_call(p_mats, x_flats, ws, bs, was, folded["ba"],
                              N, r_pad, t_rows, cout_pad, hw_list, cin_list)
    # out: (N, Cout_pad, r_pad) bf16, channel-major -> NCHW needs only slice+reshape
    out = out[:, :cout, :n_rows]
    if use_pooling:
        # TODO(synk): fuse AdaptiveAvgPool2d(1) into the kernel (row axis as an
        # 'arbitrary' reduction + pl.when finalize) to avoid materializing the
        # full (N, Cout_pad, r_pad) map for the pooled path.
        return out.astype(jnp.float32).mean(axis=2)[:, :, None, None]  # (N,Cout,1,1)
    return out.reshape(N, cout, Hy, Wy).astype(jnp.float32)            # NCHW


# Plain-JAX reference that mirrors the kernel's math and dtype path (bf16 MXU
# operands, f32 accumulation, bf16 output) for the correctness check.
def _reference_forward(folded, x_dict, y, use_pooling=False):
    N = int(y.shape[0])
    Hy, Wy = int(y.shape[-2]), int(y.shape[-1])
    acc = None
    for aux in folded["aux"]:
        xi = x_dict[aux["name"]]
        _, Ci, Hi, Wi = (int(d) for d in xi.shape)
        P = jnp.asarray(_bilinear_matrix_np((Hi, Wi), (Hy, Wy)), jnp.bfloat16)
        xf = (jnp.transpose(xi, (0, 2, 3, 1))
              .reshape(N, Hi * Wi, Ci).astype(jnp.bfloat16))
        xw = jnp.einsum("nsc,cd->nsd", xf, aux["w"],
                        preferred_element_type=jnp.float32).astype(jnp.bfloat16)
        h = jnp.einsum("rs,nsd->nrd", P, xw,
                       preferred_element_type=jnp.float32) + aux["b"]
        h = jnp.maximum(h, 0.0).astype(jnp.bfloat16)
        c = jnp.einsum("nrd,de->nre", h, aux["wa"],
                       preferred_element_type=jnp.float32)
        acc = c if acc is None else acc + c
    out = jnp.maximum(acc + folded["ba"], 0.0)[..., :folded["cout"]]
    out = out.astype(jnp.bfloat16).astype(jnp.float32)   # mirror kernel bf16 output
    if use_pooling:
        return out.mean(axis=1)[:, :, None, None]
    return out.reshape(N, Hy, Wy, folded["cout"]).transpose(0, 3, 1, 2)


if __name__ == "__main__":
    key = jax.random.PRNGKey(0)
    k_params, k_x2, k_x3, k_y = jax.random.split(key, 4)

    # layer graph: 'p4' aggregates aux layers 'p2' and 'p3'
    layer2channel = {"p2": 8, "p3": 16, "p4": 24}
    layer2auxlayers = {"p4": ["p2", "p3"]}
    name = "p4"

    params = init_cross_conv_layer(k_params, name, layer2channel, layer2auxlayers)
    folded = fold_params(params)   # BN folding done once, off the forward path

    # inputs (NCHW): aux maps at different spatial sizes, y fixes the target size
    x = {
        "p2": jax.random.normal(k_x2, (2, 8, 16, 16), jnp.float32),
        "p3": jax.random.normal(k_x3, (2, 16, 4, 4), jnp.float32),
    }
    y = jax.random.normal(k_y, (2, 24, 8, 8), jnp.float32)

    out = cross_conv_layer_forward(folded, x, y, use_pooling=False)
    out = jax.block_until_ready(out)
    assert out.shape == (2, 24, 8, 8), out.shape

    ref = jax.block_until_ready(_reference_forward(folded, x, y))
    err = float(jnp.max(jnp.abs(out - ref)))
    ref_absmax = float(jnp.max(jnp.abs(ref)))
    tol = 2e-2 * (1.0 + ref_absmax)     # mixed abs/rel tolerance for bf16 output
    assert err < tol, f"max abs err {err} (tol {tol})"

    print("KERNEL_OK")
</pallas_src>

<mosaic_0001>
module attributes {stable_mosaic.version = 11 : i64} {
  func.func @_fused_kernel(%arg0: i32, %arg1: i32, %arg2: memref<64x256xbf16, #tpu.memory_space<vmem>>, %arg3: memref<64x16xbf16, #tpu.memory_space<vmem>>, %arg4: memref<1x256x8xbf16, #tpu.memory_space<vmem>>, %arg5: memref<1x16x16xbf16, #tpu.memory_space<vmem>>, %arg6: memref<8x256xbf16, #tpu.memory_space<vmem>>, %arg7: memref<16x256xbf16, #tpu.memory_space<vmem>>, %arg8: memref<1x256xf32, #tpu.memory_space<vmem>>, %arg9: memref<1x256xf32, #tpu.memory_space<vmem>>, %arg10: memref<256x128xbf16, #tpu.memory_space<vmem>>, %arg11: memref<256x128xbf16, #tpu.memory_space<vmem>>, %arg12: memref<1x128xf32, #tpu.memory_space<vmem>>, %arg13: memref<1x128x64xbf16, #tpu.memory_space<vmem>>, %arg14: memref<64x128xf32, #tpu.memory_space<vmem>>) attributes {dimension_semantics = [#tpu.dimension_semantics<parallel>, #tpu.dimension_semantics<parallel>], iteration_bounds = array<i64: 1, 2>, scalar_prefetch = 0 : i64, scratch_operands = 1 : i64, tpu.core_type = #tpu.core_type<tc>, window_params = [{transform_indices = @transform_0, window_bounds = array<i64: 64, 256>}, {transform_indices = @transform_1, window_bounds = array<i64: 64, 16>}, {transform_indices = @transform_2, window_bounds = array<i64: 1, 256, 8>}, {transform_indices = @transform_3, window_bounds = array<i64: 1, 16, 16>}, {pipeline_mode = #tpu.pipeline_mode<synchronous>, transform_indices = @transform_4, window_bounds = array<i64: 8, 256>}, {pipeline_mode = #tpu.pipeline_mode<synchronous>, transform_indices = @transform_5, window_bounds = array<i64: 16, 256>}, {pipeline_mode = #tpu.pipeline_mode<synchronous>, transform_indices = @transform_6, window_bounds = array<i64: 1, 256>}, {pipeline_mode = #tpu.pipeline_mode<synchronous>, transform_indices = @transform_7, window_bounds = array<i64: 1, 256>}, {pipeline_mode = #tpu.pipeline_mode<synchronous>, transform_indices = @transform_8, window_bounds = array<i64: 256, 128>}, {pipeline_mode = #tpu.pipeline_mode<synchronous>, transform_indices = @transform_9, window_bounds = array<i64: 256, 128>}, {pipeline_mode = #tpu.pipeline_mode<synchronous>, transform_indices = @transform_10, window_bounds = array<i64: 1, 128>}, {transform_indices = @transform_11, window_bounds = array<i64: 1, 128, 64>}]} {
    %c0 = arith.constant 0 : index
    %c0_0 = arith.constant 0 : index
    %c0_1 = arith.constant 0 : index
    %0 = vector.load %arg4[%c0, %c0_0, %c0_1] : memref<1x256x8xbf16, #tpu.memory_space<vmem>>, vector<1x256x8xbf16>
    %1 = vector.shape_cast %0 : vector<1x256x8xbf16> to vector<256x8xbf16>
    %c0_2 = arith.constant 0 : index
    %c0_3 = arith.constant 0 : index
    %2 = vector.load %arg6[%c0_2, %c0_3] : memref<8x256xbf16, #tpu.memory_space<vmem>>, vector<8x256xbf16>
    %cst = arith.constant dense<0.000000e+00> : vector<256x256xf32>
    %3 = tpu.matmul %1, %2, %cst {dimension_numbers = #tpu.dot_dimension_numbers<[1], [0], [0], [1], [0, 0, 1, 1], [], []>} : vector<256x8xbf16>, vector<8x256xbf16>, vector<256x256xf32> -> vector<256x256xf32>
    %4 = arith.truncf %3 : vector<256x256xf32> to vector<256x256xbf16>
    %c0_4 = arith.constant 0 : index
    %c0_5 = arith.constant 0 : index
    %5 = vector.load %arg2[%c0_4, %c0_5] : memref<64x256xbf16, #tpu.memory_space<vmem>>, vector<64x256xbf16>
    %cst_6 = arith.constant dense<0.000000e+00> : vector<64x256xf32>
    %6 = tpu.matmul %5, %4, %cst_6 {dimension_numbers = #tpu.dot_dimension_numbers<[1], [0], [0], [1], [0, 0, 1, 1], [], []>} : vector<64x256xbf16>, vector<256x256xbf16>, vector<64x256xf32> -> vector<64x256xf32>
    %c0_7 = arith.constant 0 : index
    %c0_8 = arith.constant 0 : index
    %7 = vector.load %arg8[%c0_7, %c0_8] : memref<1x256xf32, #tpu.memory_space<vmem>>, vector<1x256xf32>
    %8 = vector.broadcast %7 : vector<1x256xf32> to vector<64x256xf32>
    %9 = arith.addf %6, %8 : vector<64x256xf32>
    %cst_9 = arith.constant 0.000000e+00 : f32
    %10 = vector.broadcast %cst_9 : f32 to vector<64x256xf32>
    %11 = arith.maximumf %9, %10 : vector<64x256xf32>
    %12 = arith.truncf %11 : vector<64x256xf32> to vector<64x256xbf16>
    %c0_10 = arith.constant 0 : index
    %c0_11 = arith.constant 0 : index
    %13 = vector.load %arg10[%c0_10, %c0_11] : memref<256x128xbf16, #tpu.memory_space<vmem>>, vector<256x128xbf16>
    %cst_12 = arith.constant dense<0.000000e+00> : vector<64x128xf32>
    %14 = tpu.matmul %12, %13, %cst_12 {dimension_numbers = #tpu.dot_dimension_numbers<[1], [0], [0], [1], [0, 0, 1, 1], [], []>} : vector<64x256xbf16>, vector<256x128xbf16>, vector<64x128xf32> -> vector<64x128xf32>
    %c0_13 = arith.constant 0 : index
    %c0_14 = arith.constant 0 : index
    %15 = vector.load %arg14[%c0_13, %c0_14] : memref<64x128xf32, #tpu.memory_space<vmem>>, vector<64x128xf32>
    tpu.vector_store %arg14[%c0_13, %c0_14], %14 {strides = array<i32>} : memref<64x128xf32, #tpu.memory_space<vmem>>, vector<64x128xf32>,
    %c0_15 = arith.constant 0 : index
    %c0_16 = arith.constant 0 : index
    %c0_17 = arith.constant 0 : index
    %16 = vector.load %arg5[%c0_15, %c0_16, %c0_17] : memref<1x16x16xbf16, #tpu.memory_space<vmem>>, vector<1x16x16xbf16>
    %17 = vector.shape_cast %16 : vector<1x16x16xbf16> to vector<16x16xbf16>
    %c0_18 = arith.constant 0 : index
    %c0_19 = arith.constant 0 : index
    %18 = vector.load %arg7[%c0_18, %c0_19] : memref<16x256xbf16, #tpu.memory_space<vmem>>, vector<16x256xbf16>
    %cst_20 = arith.constant dense<0.000000e+00> : vector<16x256xf32>
    %19 = tpu.matmul %17, %18, %cst_20 {dimension_numbers = #tpu.dot_dimension_numbers<[1], [0], [0], [1], [0, 0, 1, 1], [], []>} : vector<16x16xbf16>, vector<16x256xbf16>, vector<16x256xf32> -> vector<16x256xf32>
    %20 = arith.truncf %19 : vector<16x256xf32> to vector<16x256xbf16>
    %c0_21 = arith.constant 0 : index
    %c0_22 = arith.constant 0 : index
    %21 = vector.load %arg3[%c0_21, %c0_22] : memref<64x16xbf16, #tpu.memory_space<vmem>>, vector<64x16xbf16>
    %cst_23 = arith.constant dense<0.000000e+00> : vector<64x256xf32>
    %22 = tpu.matmul %21, %20, %cst_23 {dimension_numbers = #tpu.dot_dimension_numbers<[1], [0], [0], [1], [0, 0, 1, 1], [], []>} : vector<64x16xbf16>, vector<16x256xbf16>, vector<64x256xf32> -> vector<64x256xf32>
    %c0_24 = arith.constant 0 : index
    %c0_25 = arith.constant 0 : index
    %23 = vector.load %arg9[%c0_24, %c0_25] : memref<1x256xf32, #tpu.memory_space<vmem>>, vector<1x256xf32>
    %24 = vector.broadcast %23 : vector<1x256xf32> to vector<64x256xf32>
    %25 = arith.addf %22, %24 : vector<64x256xf32>
    %cst_26 = arith.constant 0.000000e+00 : f32
    %26 = vector.broadcast %cst_26 : f32 to vector<64x256xf32>
    %27 = arith.maximumf %25, %26 : vector<64x256xf32>
    %28 = arith.truncf %27 : vector<64x256xf32> to vector<64x256xbf16>
    %c0_27 = arith.constant 0 : index
    %c0_28 = arith.constant 0 : index
    %29 = vector.load %arg11[%c0_27, %c0_28] : memref<256x128xbf16, #tpu.memory_space<vmem>>, vector<256x128xbf16>
    %cst_29 = arith.constant dense<0.000000e+00> : vector<64x128xf32>
    %30 = tpu.matmul %28, %29, %cst_29 {dimension_numbers = #tpu.dot_dimension_numbers<[1], [0], [0], [1], [0, 0, 1, 1], [], []>} : vector<64x256xbf16>, vector<256x128xbf16>, vector<64x128xf32> -> vector<64x128xf32>
    %c0_30 = arith.constant 0 : index
    %c0_31 = arith.constant 0 : index
    %31 = vector.load %arg14[%c0_30, %c0_31] : memref<64x128xf32, #tpu.memory_space<vmem>>, vector<64x128xf32>
    %32 = arith.addf %31, %30 : vector<64x128xf32>
    %c0_32 = arith.constant 0 : index
    %c0_33 = arith.constant 0 : index
    %33 = vector.load %arg14[%c0_32, %c0_33] : memref<64x128xf32, #tpu.memory_space<vmem>>, vector<64x128xf32>
    tpu.vector_store %arg14[%c0_32, %c0_33], %32 {strides = array<i32>} : memref<64x128xf32, #tpu.memory_space<vmem>>, vector<64x128xf32>,
    %c0_34 = arith.constant 0 : index
    %c0_35 = arith.constant 0 : index
    %34 = vector.load %arg14[%c0_34, %c0_35] : memref<64x128xf32, #tpu.memory_space<vmem>>, vector<64x128xf32>
    %c0_36 = arith.constant 0 : index
    %c0_37 = arith.constant 0 : index
    %35 = vector.load %arg12[%c0_36, %c0_37] : memref<1x128xf32, #tpu.memory_space<vmem>>, vector<1x128xf32>
    %36 = vector.broadcast %35 : vector<1x128xf32> to vector<64x128xf32>
    %37 = arith.addf %34, %36 : vector<64x128xf32>
    %cst_38 = arith.constant 0.000000e+00 : f32
    %38 = vector.broadcast %cst_38 : f32 to vector<64x128xf32>
    %39 = arith.maximumf %37, %38 : vector<64x128xf32>
    %40 = tpu.transpose %39, [1, 0] : vector<64x128xf32> -> vector<128x64xf32>
    %41 = arith.truncf %40 : vector<128x64xf32> to vector<128x64xbf16>
    %c0_39 = arith.constant 0 : index
    %c0_40 = arith.constant 0 : index
    %c0_41 = arith.constant 0 : index
    %42 = vector.load %arg13[%c0_39, %c0_40, %c0_41] : memref<1x128x64xbf16, #tpu.memory_space<vmem>>, vector<1x128x64xbf16>
    %43 = vector.shape_cast %42 : vector<1x128x64xbf16> to vector<128x64xbf16>
    %44 = vector.shape_cast %41 : vector<128x64xbf16> to vector<1x128x64xbf16>
    tpu.vector_store %arg13[%c0_39, %c0_40, %c0_41], %44 {strides = array<i32>} : memref<1x128x64xbf16, #tpu.memory_space<vmem>>, vector<1x128x64xbf16>,
    return
  }
  func.func @transform_0(%arg0: i32, %arg1: i32) -> (i32, i32) {
    %c0_i32 = arith.constant 0 : i32
    %c0_i32_0 = arith.constant 0 : i32
    return %arg0, %c0_i32 : i32, i32
  }
  func.func @transform_1(%arg0: i32, %arg1: i32) -> (i32, i32) {
    %c0_i32 = arith.constant 0 : i32
    %c0_i32_0 = arith.constant 0 : i32
    return %arg0, %c0_i32 : i32, i32
  }
  func.func @transform_2(%arg0: i32, %arg1: i32) -> (i32, i32, i32) {
    %c0_i32 = arith.constant 0 : i32
    %c0_i32_0 = arith.constant 0 : i32
    %c0_i32_1 = arith.constant 0 : i32
    return %arg1, %c0_i32, %c0_i32_0 : i32, i32, i32
  }
  func.func @transform_3(%arg0: i32, %arg1: i32) -> (i32, i32, i32) {
    %c0_i32 = arith.constant 0 : i32
    %c0_i32_0 = arith.constant 0 : i32
    %c0_i32_1 = arith.constant 0 : i32
    return %arg1, %c0_i32, %c0_i32_0 : i32, i32, i32
  }
  func.func @transform_4(%arg0: i32, %arg1: i32) -> (i32, i32) {
    %c0_i32 = arith.constant 0 : i32
    %c0_i32_0 = arith.constant 0 : i32
    %c0_i32_1 = arith.constant 0 : i32
    return %c0_i32, %c0_i32_0 : i32, i32
  }
  func.func @transform_5(%arg0: i32, %arg1: i32) -> (i32, i32) {
    %c0_i32 = arith.constant 0 : i32
    %c0_i32_0 = arith.constant 0 : i32
    %c0_i32_1 = arith.constant 0 : i32
    return %c0_i32, %c0_i32_0 : i32, i32
  }
  func.func @transform_6(%arg0: i32, %arg1: i32) -> (i32, i32) {
    %c0_i32 = arith.constant 0 : i32
    %c0_i32_0 = arith.constant 0 : i32
    %c0_i32_1 = arith.constant 0 : i32
    return %c0_i32, %c0_i32_0 : i32, i32
  }
  func.func @transform_7(%arg0: i32, %arg1: i32) -> (i32, i32) {
    %c0_i32 = arith.constant 0 : i32
    %c0_i32_0 = arith.constant 0 : i32
    %c0_i32_1 = arith.constant 0 : i32
    return %c0_i32, %c0_i32_0 : i32, i32
  }
  func.func @transform_8(%arg0: i32, %arg1: i32) -> (i32, i32) {
    %c0_i32 = arith.constant 0 : i32
    %c0_i32_0 = arith.constant 0 : i32
    %c0_i32_1 = arith.constant 0 : i32
    return %c0_i32, %c0_i32_0 : i32, i32
  }
  func.func @transform_9(%arg0: i32, %arg1: i32) -> (i32, i32) {
    %c0_i32 = arith.constant 0 : i32
    %c0_i32_0 = arith.constant 0 : i32
    %c0_i32_1 = arith.constant 0 : i32
    return %c0_i32, %c0_i32_0 : i32, i32
  }
  func.func @transform_10(%arg0: i32, %arg1: i32) -> (i32, i32) {
    %c0_i32 = arith.constant 0 : i32
    %c0_i32_0 = arith.constant 0 : i32
    %c0_i32_1 = arith.constant 0 : i32
    return %c0_i32, %c0_i32_0 : i32, i32
  }
  func.func @transform_11(%arg0: i32, %arg1: i32) -> (i32, i32, i32) {
    %c0_i32 = arith.constant 0 : i32
    %c0_i32_0 = arith.constant 0 : i32
    return %arg1, %c0_i32, %arg0 : i32, i32, i32
  }
}

</mosaic_0001>

<bundles_post_ra>
// kernel: tpu_custom_call.1
= control target key start
LH: loop header
LB: loop body
LE: loop exit
PB: predicated region body
PF: predicated region fallthrough
CT: control target
= control target key end

     0   :  { %16 = vsyncpa [#allocation4], 0  ;;  %s2377_s17 = smov 0   ;;  %s2379_s18 = smov 0   ;;  %s2733_s0 = inlined_call_operand.hbm [shape: bf16[64,256], index: 0, kind: input, shape index: {}]   ;;  %s2734_s1 = inlined_call_operand.vmem [shape: bf16[64,16], index: 1, kind: input, shape index: {}]   ;;  %s2735_s2 = inlined_call_operand.vmem [shape: bf16[2,256,8], index: 2, kind: input, shape index: {}]   ;;  %s2736_s3 = inlined_call_operand.vmem [shape: bf16[2,16,16], index: 3, kind: input, shape index: {}]   ;;  %s2737_s4 = inlined_call_operand.vmem [shape: bf16[8,256], index: 4, kind: input, shape index: {}]   ;;  %s2738_s5 = inlined_call_operand.vmem [shape: bf16[16,256], index: 5, kind: input, shape index: {}]   ;;  %s2739_s6 = inlined_call_operand.vmem [shape: f32[1,256], index: 6, kind: input, shape index: {}]   ;;  %s2740_s7 = inlined_call_operand.vmem [shape: f32[1,256], index: 7, kind: input, shape index: {}]   ;;  %s2741_s8 = inlined_call_operand.vmem [shape: bf16[256,128], index: 8, kind: input, shape index: {}]   ;;  %s2742_s9 = inlined_call_operand.vmem [shape: bf16[256,128], index: 9, kind: input, shape index: {}]   ;;  %s2743_s10 = inlined_call_operand.vmem [shape: f32[1,128], index: 10, kind: input, shape index: {}]   ;;  %s2744_s11 = inlined_call_operand.vmem [shape: bf16[2,128,64], index: 11, kind: output, shape index: {}]  }
   0x1   :  { %s2381_s19 = smov 0  }
   0x2 LB: > { %s1929_s20 = sadd.s32 4294967295, %s2311_s19   ;;  %s31_s21 = sadd.s32 1, %s2307_s18  ;;  %s2311_s19 = sphi %s2381_s19, %s22_s19   ;;  %s2307_s18 = sphi %s2379_s18, %s2754_s18   ;;  %s2303_s17 = sphi %s2377_s17, %s2753_s17  }
   0x3   : > { %p32_p0 = scmp.ge.s32.totalorder %s31_s21, 2  ;;  %p1931_p1 = scmp.ge.s32.totalorder %s2311_s19, 1 }
   0x4   : > { %p318_p2 = scmp.lt.s32.totalorder %s2311_s19, 3  ;;  %p2402_p4 = scmp.eq.s32.totalorder %s1929_s20, 0 }
   0x5   : > { %s2756_s21 = smov (%p32_p0, %s31_s21), 0  ;;  %s2313_s24 = smov [#allocation3]  }
   0x6   : > { %p2398_p3 = pnand %p1931_p1, %p318_p2  ;;  %s334_s25 = sshll.u32 %s2313_s24, 4  ;;  %s335_s25 = int_to_ptr.vmem [resolvable:$true] %s334_s25 }
   0x7   : > { %s2749_s23 = scalar_select %p2402_p4, 1, 0 }
   0x8   : > { %s2748_s22 = scalar_select %p2398_p3, 1, 0 }
   0x9   : > { %p2152_p5 = pneg %p2398_p3  ;;  %s2257_s29 = scalar_lea.hbm %s2733_s0, 1024 }
   0xa   : > { %p2258_p7 = scmp.ne.s32.totalorder %s2733_s0, %s2257_s29  ;;  %p2264_p11 = scmp.lt.u32.totalorder %s2257_s29, %s2733_s0 }
   0xb   : > { %p2410_p6 = pnand %p2402_p4, %p2152_p5 }
   0xd   : > { %p2259_p8 = pneg %p2410_p6 }
   0xf   : > { %p2260_p9 = pnand %p2259_p8, %p2258_p7 }
  0x11   : > { %p2261_p10 = pneg %p2260_p9 }
  0x13   : > { %p2266_p12 = pnand %p2264_p11, %p2261_p10 }
  0x15   : > { %2269 = shalt.err (!%p2266_p12)
}
  0x16   : > { %s2270_s15 = scalar_lea.vmem %s335_s25, 1024  ;;  %p2278_p2 = scmp.lt.s32.totalorder %s335_s25, %s335_s25 }
  0x17   : > { %p2271_p13 = scmp.ne.s32.totalorder %s335_s25, %s2270_s15  ;;  %p2279_p5 = scmp.lt.s32.totalorder %s2270_s15, %s2270_s15 }
  0x19   : > { %p2273_p0 = pnand %p2271_p13, %p2259_p8  ;;  %p2280_p4 = por %p2279_p5, %p2278_p2 }
  0x1b   : > { %p2274_p1 = pneg %p2273_p0 }
  0x1d   : > { %p2281_p3 = pnand %p2280_p4, %p2274_p1 }
  0x1f   : > { %2284 = shalt.err (!%p2281_p3)
}
  0x20   : > { %s2314_s16 = smov 128   ;;  %s2315_s20 = smov 8  }
  0x21   : > { %2155 = dma.hbm_to_vmem [thread:$0]  (!%p2410_p6), %s2733_s0, 1024, %s335_s25, [#allocation4], %s2314_s16, %s2314_s16, %s2315_s20  }
  0x22   : > { %p2751_p7 = scmp.ne.s32.totalorder %s2748_s22, 0 }
  0x23   : > { %p2752_p9 = scmp.ne.s32.totalorder (!%p2751_p7), %s2749_s23, 0 }
  0x24   : > { %396 = sbr.rel (%p2751_p7) target bundleno = 1059 (0x423), region = 64 }
  0x2b   : > { %2298 = dma.done.wait (%p2752_p9), [#allocation4], 1024  }
  0x2c   : > { %2300 = vsyncadd (%p2752_p9), [#allocation4], 4294966272  ;;  %p456_p3 = scmp.lt.s32.totalorder %s2303_s17, 1  ;;  %v2316_v0 = vmov 0   ;;  %v507_v1 = vld [vmem:[%s2737_s4] sm:$0xff]  ;;  %vm642_vm0 = vcmask 1043456  }
  0x2d   : > { %681 = vmatprep.mubr.bf16.mxu0 %v2316_v0  ;;  %v1960_v2 = vcombine.high %v507_v1, %v507_v1  ;;  %v1959_v3 = vcombine.low %v507_v1, %v507_v1  ;;  %vm593_vm1 = vcmask 64512   ;;  %v2192_v6 = vld [vmem:[%s2738_s5] ss:$8 sps:$4 sm:$0xff]   ;;  %v2194_v7 = vld [vmem:[%s2738_s5 + $0x4] ss:$8 sps:$4 sm:$0xff]   ;;  %vm1251_vm2 = vcmask 130048  }
  0x2e   : > { %s2758_s17 = smov (!%p456_p3, %s2303_s17), 1  ;;  %v2211_v24 = vld [vmem:[#allocation3 + $0x4] ss:$8 sps:$4 sm:$0xff]   ;;  %vm1793_vm3 = vcmask 519168  }
  0x2f   : > { %s2049_s26 = sshll.u32 %s2758_s17, 7  ;;  %1961 = vmatprep.subr.msk.bf16.mxu0 %vm642_vm0, %v1960_v2  ;;  %v644_v4 = vsel %vm642_vm0, %v1959_v3, 0  ;;  %s2050_s15 = sshll.u32 %s2758_s17, 3  ;;  %966 = vmatprep.mubr.bf16.mxu1 %v2211_v24 }
  0x30   : > { %s2445_s22 = scalar_lea.vmem %s2735_s2, %s2049_s26  ;;  %650 = vmatpush1.bf16.msra.mxu0 %v644_v4  ;;  %s2466_s24 = scalar_lea.vmem %s2736_s3, %s2050_s15 }
  0x31   : > { %v2189_v5 = vld [vmem:[%s2445_s22] sm:$0xff]   ;;  %1255 = vmatprep.subr.bf16.mxu0 %v2194_v7  ;;  %v2190_v8 = vld [vmem:[%s2445_s22 + $0x8] sm:$0xff]   ;;  %v2191_v9 = vld [vmem:[%s2445_s22 + $0x10] sm:$0xff]   ;;  %s2051_s28 = sshll.u32 %s2758_s17, 6 }
  0x32   : > { %v2195_v10 = vld [vmem:[%s2445_s22 + $0x18] sm:$0xff]   ;;  %v2196_v11 = vld [vmem:[%s2445_s22 + $0x20] sm:$0xff]   ;;  %v2197_v12 = vld [vmem:[%s2445_s22 + $0x28] sm:$0xff]   ;;  %s2690_s30 = scalar_lea.vmem %s2744_s11, %s2051_s28 }
  0x33   : > { %1962 = vmatmul.mubr.msk.bf16.vlgmr.msra.gmra.mrb[0].mxu0 %vm593_vm1, %v2189_v5  ;;  %v2198_v13 = vld [vmem:[%s2445_s22 + $0x30] sm:$0xff]   ;;  %v2199_v14 = vld [vmem:[%s2445_s22 + $0x38] sm:$0xff]   ;;  %v2200_v15 = vld [vmem:[%s2445_s22 + $0x40] sm:$0xff]  }
  0x34   : > { %691 = vmatprep.mubr.bf16.mxu0 %v2316_v0  ;;  %1256 = vmatpush1.bf16.msra.mxu0 %v2192_v6  ;;  %v2201_v16 = vld [vmem:[%s2445_s22 + $0x48] sm:$0xff]   ;;  %v2202_v17 = vld [vmem:[%s2445_s22 + $0x50] sm:$0xff]   ;;  %v2203_v18 = vld [vmem:[%s2445_s22 + $0x58] sm:$0xff]  }
  0x35   : > { %v2204_v19 = vld [vmem:[%s2445_s22 + $0x60] sm:$0xff]   ;;  %v2205_v20 = vld [vmem:[%s2445_s22 + $0x68] sm:$0xff]   ;;  %v2206_v21 = vld [vmem:[%s2445_s22 + $0x70] sm:$0xff]  }
  0x36   : > { %v2207_v22 = vld [vmem:[%s2445_s22 + $0x78] sm:$0xff]   ;;  %v2208_v23 = vld [vmem:[%s2466_s24] sm:$0xff]  }
  0x3b   : > { %1963 = vmatmul.mubr.msk.bf16.gmra.mrb[4].mxu0 %vm593_vm1, %v2190_v8 }
  0x3c   : > { %701 = vmatprep.mubr.bf16.mxu0 %v2316_v0 }
  0x43   : > { %1964 = vmatmul.mubr.msk.bf16.gmra.mrb[8].mxu0 %vm593_vm1, %v2191_v9 }
  0x44   : > { %711 = vmatprep.mubr.bf16.mxu0 %v2316_v0 }
  0x4b   : > { %1965 = vmatmul.mubr.msk.bf16.gmra.mrb[12].mxu0 %vm593_vm1, %v2195_v10 }
  0x4c   : > { %721 = vmatprep.mubr.bf16.mxu0 %v2316_v0 }
  0x53   : > { %1966 = vmatmul.mubr.msk.bf16.gmra.mrb[16].mxu0 %vm593_vm1, %v2196_v11 }
  0x54   : > { %731 = vmatprep.mubr.bf16.mxu0 %v2316_v0 }
  0x5b   : > { %1967 = vmatmul.mubr.msk.bf16.gmra.mrb[20].mxu0 %vm593_vm1, %v2197_v12 }
  0x5c   : > { %741 = vmatprep.mubr.bf16.mxu0 %v2316_v0 }
  0x63   : > { %1968 = vmatmul.mubr.msk.bf16.gmra.mrb[24].mxu0 %vm593_vm1, %v2198_v13 }
  0x64   : > { %751 = vmatprep.mubr.bf16.mxu0 %v2316_v0 }
  0x6b   : > { %1969 = vmatmul.mubr.msk.bf16.gmra.mrb[28].mxu0 %vm593_vm1, %v2199_v14 }
  0x6c   : > { %761 = vmatprep.mubr.bf16.mxu0 %v2316_v0 }
  0x73   : > { %1970 = vmatmul.mubr.msk.bf16.gmra.mrb[32].mxu0 %vm593_vm1, %v2200_v15 }
  0x74   : > { %771 = vmatprep.mubr.bf16.mxu0 %v2316_v0 }
  0x7b   : > { %1971 = vmatmul.mubr.msk.bf16.gmra.mrb[36].mxu0 %vm593_vm1, %v2201_v16 }
  0x7c   : > { %781 = vmatprep.mubr.bf16.mxu0 %v2316_v0 }
  0x83   : > { %1972 = vmatmul.mubr.msk.bf16.gmra.mrb[40].mxu0 %vm593_vm1, %v2202_v17 }
  0x84   : > { %791 = vmatprep.mubr.bf16.mxu0 %v2316_v0 }
  0x8b   : > { %1973 = vmatmul.mubr.msk.bf16.gmra.mrb[44].mxu0 %vm593_vm1, %v2203_v18 }
  0x8c   : > { %801 = vmatprep.mubr.bf16.mxu0 %v2316_v0 }
  0x93   : > { %1974 = vmatmul.mubr.msk.bf16.gmra.mrb[48].mxu0 %vm593_vm1, %v2204_v19 }
  0x94   : > { %811 = vmatprep.mubr.bf16.mxu0 %v2316_v0 }
  0x9b   : > { %1975 = vmatmul.mubr.msk.bf16.gmra.mrb[52].mxu0 %vm593_vm1, %v2205_v20 }
  0x9c   : > { %821 = vmatprep.mubr.bf16.mxu0 %v2316_v0 }
  0xa3   : > { %1976 = vmatmul.mubr.msk.bf16.gmra.mrb[56].mxu0 %vm593_vm1, %v2206_v21 }
  0xa4   : > { %831 = vmatprep.mubr.bf16.mxu0 %v2316_v0 }
  0xab   : > { %1977 = vmatmul.mubr.msk.bf16.gmra.mrb[60].mxu0 %vm593_vm1, %v2207_v22 }
  0xac   : > { %1287 = vmatprep.mubr.bf16.mxu0 %v2316_v0 }
  0xb3   : > { %2005 = vmatmul.mubr.msk.bf16.vlgmr.msra.gmra.mrb[64].mxu0 %vm1251_vm2, %v2208_v23 }
  0xb4   : > { %1384 = vmatprep.mubr.bf16.mxu0 %v2316_v0 }
 0x106   : > { %v683_v25 = vpop.f32.mrb[0].mxu0 }
 0x107   : > { %v685_v26 = vpop.f32.mrb[1].mxu0 }
 0x108   : > { %v687_v27 = vpop.f32.mrb[2].mxu0 }
 0x109   : > { %v842_v28 = vpack.c.bf16 %v687_v27, %v683_v25  ;;  %v689_v29 = vpop.f32.mrb[3].mxu0 }
 0x10a   : > { %v843_v30 = vpack.c.bf16 %v689_v29, %v685_v26 }
 0x10c   : > { %934 = vmatprep.subr.bf16.mxu1 %v843_v30 }
 0x10d   : > { %935 = vmatpush1.bf16.msra.mxu1 %v842_v28 }
 0x10e   : > { %v693_v31 = vpop.f32.mrb[4].mxu0 }
 0x10f   : > { %v695_v32 = vpop.f32.mrb[5].mxu0 }
 0x110   : > { %v697_v33 = vpop.f32.mrb[6].mxu0 }
 0x111   : > { %v844_v34 = vpack.c.bf16 %v697_v33, %v693_v31  ;;  %v699_v35 = vpop.f32.mrb[7].mxu0 }
 0x112   : > { %v845_v36 = vpack.c.bf16 %v699_v35, %v695_v32 }
 0x114   : > { %936 = vmatprep.subr.bf16.mxu1 %v845_v36 }
 0x115   : > { %937 = vmatpush1.bf16.msra.mxu1 %v844_v34 }
 0x116   : > { %v703_v37 = vpop.f32.mrb[8].mxu0 }
 0x117   : > { %v705_v38 = vpop.f32.mrb[9].mxu0 }
 0x118   : > { %v707_v39 = vpop.f32.mrb[10].mxu0 }
 0x119   : > { %v846_v40 = vpack.c.bf16 %v707_v39, %v703_v37  ;;  %v709_v41 = vpop.f32.mrb[11].mxu0 }
 0x11a   : > { %v847_v42 = vpack.c.bf16 %v709_v41, %v705_v38 }
 0x11c   : > { %938 = vmatprep.subr.bf16.mxu1 %v847_v42 }
 0x11d   : > { %939 = vmatpush1.bf16.msra.mxu1 %v846_v40 }
 0x11e   : > { %v713_v43 = vpop.f32.mrb[12].mxu0 }
 0x11f   : > { %v715_v44 = vpop.f32.mrb[13].mxu0 }
 0x120   : > { %v717_v45 = vpop.f32.mrb[14].mxu0 }
 0x121   : > { %v848_v46 = vpack.c.bf16 %v717_v45, %v713_v43  ;;  %v719_v47 = vpop.f32.mrb[15].mxu0 }
 0x122   : > { %v849_v48 = vpack.c.bf16 %v719_v47, %v715_v44 }
 0x124   : > { %940 = vmatprep.subr.bf16.mxu1 %v849_v48 }
 0x125   : > { %941 = vmatpush1.bf16.msra.mxu1 %v848_v46 }
 0x126   : > { %v723_v49 = vpop.f32.mrb[16].mxu0 }
 0x127   : > { %v725_v50 = vpop.f32.mrb[17].mxu0 }
 0x128   : > { %v727_v51 = vpop.f32.mrb[18].mxu0 }
 0x129   : > { %v850_v52 = vpack.c.bf16 %v727_v51, %v723_v49  ;;  %v729_v53 = vpop.f32.mrb[19].mxu0 }
 0x12a   : > { %v851_v54 = vpack.c.bf16 %v729_v53, %v725_v50 }
 0x12c   : > { %942 = vmatprep.subr.bf16.mxu1 %v851_v54 }
 0x12d   : > { %943 = vmatpush1.bf16.msra.mxu1 %v850_v52 }
 0x12e   : > { %v733_v55 = vpop.f32.mrb[20].mxu0 }
 0x12f   : > { %v735_v56 = vpop.f32.mrb[21].mxu0 }
 0x130   : > { %v737_v57 = vpop.f32.mrb[22].mxu0 }
 0x131   : > { %v852_v58 = vpack.c.bf16 %v737_v57, %v733_v55  ;;  %v739_v59 = vpop.f32.mrb[23].mxu0 }
 0x132   : > { %v853_v60 = vpack.c.bf16 %v739_v59, %v735_v56  ;;  %v2209_v59 = vld [vmem:[#allocation3] ss:$8 sps:$4 sm:$0xff]  }
 0x134   : > { %944 = vmatprep.subr.bf16.mxu1 %v853_v60  ;;  %v2212_v60 = vld [vmem:[#allocation3 + $0x14] ss:$8 sps:$4 sm:$0xff]  }
 0x135   : > { %945 = vmatpush1.bf16.msra.mxu1 %v852_v58  ;;  %v2225_v58 = vld [vmem:[%s2741_s8 + $0x40] sm:$0xff]  }
 0x136   : > { %v743_v61 = vpop.f32.mrb[24].mxu0 }
 0x137   : > { %v745_v62 = vpop.f32.mrb[25].mxu0 }
 0x138   : > { %v747_v63 = vpop.f32.mrb[26].mxu0 }
 0x139   : > { %v854_v1 = vpack.c.bf16 %v747_v63, %v743_v61  ;;  %v749_v2 = vpop.f32.mrb[27].mxu0  ;;  %v2226_v61 = vld [vmem:[%s2741_s8] sm:$0xff]   ;;  %v2227_v63 = vld [vmem:[%s2741_s8 + $0x48] sm:$0xff]  }
 0x13a   : > { %v855_v3 = vpack.c.bf16 %v749_v2, %v745_v62 }
 0x13c   : > { %946 = vmatprep.subr.bf16.mxu1 %v855_v3 }
 0x13d   : > { %947 = vmatpush1.bf16.msra.mxu1 %v854_v1 }
 0x13e   : > { %v753_v4 = vpop.f32.mrb[28].mxu0 }
 0x13f   : > { %v755_v5 = vpop.f32.mrb[29].mxu0 }
 0x140   : > { %v757_v6 = vpop.f32.mrb[30].mxu0 }
 0x141   : > { %v856_v7 = vpack.c.bf16 %v757_v6, %v753_v4  ;;  %v759_v8 = vpop.f32.mrb[31].mxu0 }
 0x142   : > { %v857_v9 = vpack.c.bf16 %v759_v8, %v755_v5  ;;  %v2228_v5 = vld [vmem:[%s2741_s8 + $0x8] sm:$0xff]   ;;  %v2214_v8 = vld [vmem:[#allocation3 + $0x10] ss:$8 sps:$4 sm:$0xff]  }
 0x144   : > { %948 = vmatprep.subr.bf16.mxu1 %v857_v9  ;;  %v2221_v9 = vld [vmem:[%s2734_s1] sm:$0xff]  }
 0x145   : > { %949 = vmatpush1.bf16.msra.mxu1 %v856_v7  ;;  %v2229_v7 = vld [vmem:[%s2741_s8 + $0x50] sm:$0xff]  }
 0x146   : > { %v763_v10 = vpop.f32.mrb[32].mxu0 }
 0x147   : > { %v765_v11 = vpop.f32.mrb[33].mxu0 }
 0x148   : > { %v767_v12 = vpop.f32.mrb[34].mxu0 }
 0x149   : > { %v858_v13 = vpack.c.bf16 %v767_v12, %v763_v10  ;;  %v769_v14 = vpop.f32.mrb[35].mxu0  ;;  %v2215_v10 = vld [vmem:[#allocation3 + $0x24] ss:$8 sps:$4 sm:$0xff]   ;;  %v2231_v12 = vld [vmem:[%s2741_s8 + $0x58] sm:$0xff]  }
 0x14a   : > { %v859_v15 = vpack.c.bf16 %v769_v14, %v765_v11  ;;  %v2230_v11 = vld [vmem:[%s2741_s8 + $0x10] sm:$0xff]   ;;  %v2233_v14 = vld [vmem:[%s2741_s8 + $0x60] sm:$0xff]  }
 0x14c   : > { %950 = vmatprep.subr.bf16.mxu1 %v859_v15  ;;  %v2217_v15 = vld [vmem:[#allocation3 + $0x20] ss:$8 sps:$4 sm:$0xff]  }
 0x14d   : > { %951 = vmatpush1.bf16.msra.mxu1 %v858_v13  ;;  %v2232_v13 = vld [vmem:[%s2741_s8 + $0x18] sm:$0xff]  }
 0x14e   : > { %v773_v16 = vpop.f32.mrb[36].mxu0 }
 0x14f   : > { %v775_v17 = vpop.f32.mrb[37].mxu0 }
 0x150   : > { %v777_v18 = vpop.f32.mrb[38].mxu0 }
 0x151   : > { %v860_v19 = vpack.c.bf16 %v777_v18, %v773_v16  ;;  %v779_v20 = vpop.f32.mrb[39].mxu0  ;;  %v2222_v16 = vld [vmem:[%s2734_s1 + $0x8] sm:$0xff]   ;;  %v2234_v18 = vld [vmem:[%s2741_s8 + $0x20] sm:$0xff]  }
 0x152   : > { %v861_v21 = vpack.c.bf16 %v779_v20, %v775_v17  ;;  %v2218_v17 = vld [vmem:[#allocation3 + $0x34] ss:$8 sps:$4 sm:$0xff]   ;;  %v2236_v20 = vld [vmem:[%s2741_s8 + $0x28] sm:$0xff]  }
 0x154   : > { %952 = vmatprep.subr.bf16.mxu1 %v861_v21  ;;  %v2220_v21 = vld [vmem:[#allocation3 + $0x30] ss:$8 sps:$4 sm:$0xff]  }
 0x155   : > { %953 = vmatpush1.bf16.msra.mxu1 %v860_v19  ;;  %v2235_v19 = vld [vmem:[%s2741_s8 + $0x68] sm:$0xff]  }
 0x156   : > { %v783_v22 = vpop.f32.mrb[40].mxu0 }
 0x157   : > { %v785_v23 = vpop.f32.mrb[41].mxu0 }
 0x158   : > { %v787_v24 = vpop.f32.mrb[42].mxu0 }
 0x159   : > { %v862_v25 = vpack.c.bf16 %v787_v24, %v783_v22  ;;  %v789_v26 = vpop.f32.mrb[43].mxu0  ;;  %v2223_v22 = vld [vmem:[%s2734_s1 + $0x10] sm:$0xff]  }
 0x15a   : > { %v863_v27 = vpack.c.bf16 %v789_v26, %v785_v23  ;;  %v2224_v23 = vld [vmem:[%s2734_s1 + $0x18] sm:$0xff]   ;;  %v2237_v24 = vld [vmem:[%s2741_s8 + $0x70] sm:$0xff]  }
 0x15b   : > { %v2240_v26 = vld [vmem:[%s2741_s8 + $0x38] sm:$0xff]  }
 0x15c   : > { %954 = vmatprep.subr.bf16.mxu1 %v863_v27  ;;  %v2241_v27 = vld [vmem:[%s2742_s9 + $0x40] sm:$0xff]  }
 0x15d   : > { %955 = vmatpush1.bf16.msra.mxu1 %v862_v25  ;;  %v2238_v25 = vld [vmem:[%s2741_s8 + $0x30] sm:$0xff]  }
 0x15e   : > { %v793_v28 = vpop.f32.mrb[44].mxu0 }
 0x15f   : > { %v795_v29 = vpop.f32.mrb[45].mxu0 }
 0x160   : > { %v797_v30 = vpop.f32.mrb[46].mxu0 }
 0x161   : > { %v864_v31 = vpack.c.bf16 %v797_v30, %v793_v28  ;;  %v799_v32 = vpop.f32.mrb[47].mxu0  ;;  %v884_v28 = vlaneseq }
 0x162   : > { %v865_v33 = vpack.c.bf16 %v799_v32, %v795_v29 }
 0x163   : > { %v885_v29 = vshrl.u32 %v884_v28, 7 }
 0x164   : > { %956 = vmatprep.subr.bf16.mxu1 %v865_v33 }
 0x165   : > { %957 = vmatpush1.bf16.msra.mxu1 %v864_v31  ;;  %v886_v30 = vsub.s32 0, %v885_v29  ;;  %v882_v31 = vld [vmem:[%s2739_s6] sm:$0x3]  ;;  %v890_v32 = vsub.s32 1, %v885_v29 }
 0x166   : > { %v803_v34 = vpop.f32.mrb[48].mxu0 }
 0x167   : > { %v805_v35 = vpop.f32.mrb[49].mxu0  ;;  %v2586_v33 = vrot.slane %v882_v31, %v886_v30 }
 0x168   : > { %v807_v36 = vpop.f32.mrb[50].mxu0 }
 0x169   : > { %v866_v37 = vpack.c.bf16 %v807_v36, %v803_v34  ;;  %v809_v38 = vpop.f32.mrb[51].mxu0  ;;  %v2588_v34 = vrot.slane %v882_v31, %v890_v32 }
 0x16a   : > { %v867_v39 = vpack.c.bf16 %v809_v38, %v805_v35 }
 0x16c   : > { %958 = vmatprep.subr.bf16.mxu1 %v867_v39 }
 0x16d   : > { %959 = vmatpush1.bf16.msra.mxu1 %v866_v37 }
 0x16e   : > { %v813_v40 = vpop.f32.mrb[52].mxu0 }
 0x16f   : > { %v815_v41 = vpop.f32.mrb[53].mxu0 }
 0x170   : > { %v817_v42 = vpop.f32.mrb[54].mxu0 }
 0x171   : > { %v868_v43 = vpack.c.bf16 %v817_v42, %v813_v40  ;;  %v819_v44 = vpop.f32.mrb[55].mxu0  ;;  %v1308_v40 = vld [vmem:[%s2740_s7] sm:$0x3] }
 0x172   : > { %v869_v45 = vpack.c.bf16 %v819_v44, %v815_v41 }
 0x174   : > { %960 = vmatprep.subr.bf16.mxu1 %v869_v45 }
 0x175   : > { %961 = vmatpush1.bf16.msra.mxu1 %v868_v43 }
 0x176   : > { %v823_v46 = vpop.f32.mrb[56].mxu0 }
 0x177   : > { %v825_v47 = vpop.f32.mrb[57].mxu0 }
 0x178   : > { %v827_v48 = vpop.f32.mrb[58].mxu0 }
 0x179   : > { %v870_v49 = vpack.c.bf16 %v827_v48, %v823_v46  ;;  %v829_v50 = vpop.f32.mrb[59].mxu0  ;;  %v2597_v46 = vrot.slane %v1308_v40, %v886_v30 }
 0x17a   : > { %v871_v51 = vpack.c.bf16 %v829_v50, %v825_v47 }
 0x17c   : > { %962 = vmatprep.subr.bf16.mxu1 %v871_v51 }
 0x17d   : > { %963 = vmatpush1.bf16.msra.mxu1 %v870_v49  ;;  %v2599_v49 = vrot.slane %v1308_v40, %v890_v32  ;;  %v2248_v40 = vld [vmem:[%s2742_s9 + $0x18] sm:$0xff]  }
 0x17e   : > { %v833_v52 = vpop.f32.mrb[60].mxu0 }
 0x17f   : > { %v835_v53 = vpop.f32.mrb[61].mxu0 }
 0x180   : > { %v837_v54 = vpop.f32.mrb[62].mxu0 }
 0x181   : > { %v872_v55 = vpack.c.bf16 %v837_v54, %v833_v52  ;;  %v839_v56 = vpop.f32.mrb[63].mxu0 }
 0x182   : > { %v873_v57 = vpack.c.bf16 %v839_v56, %v835_v53  ;;  %v2242_v53 = vld [vmem:[%s2742_s9] sm:$0xff]  }
 0x184   : > { %964 = vmatprep.subr.bf16.mxu1 %v873_v57  ;;  %v2243_v57 = vld [vmem:[%s2742_s9 + $0x48] sm:$0xff]  }
 0x185   : > { %965 = vmatpush1.bf16.msra.mxu1 %v872_v55 }
 0x186   : > { %v1289_v62 = vpop.f32.mrb[64].mxu0  ;;  %2068 = vmatprep.subr.bf16.mxu1 %v2225_v58 }
 0x187   : > { %v1291_v1 = vpop.f32.mrb[65].mxu0 }
 0x188   : > { %967 = vmatmul.mubr.bf16.vlgmr.msra.gmra.mrb[0].mxu1 %v2209_v59  ;;  %v1293_v2 = vpop.f32.mrb[66].mxu0 }
 0x189   : > { %976 = vmatprep.mubr.bf16.mxu1 %v2212_v60  ;;  %v1298_v3 = vpack.c.bf16 %v1293_v2, %v1289_v62  ;;  %v1295_v4 = vpop.f32.mrb[67].mxu0  ;;  %2069 = vmatpush3.bf16.msra.mxu1 %v2226_v61 }
 0x18a   : > { %v1299_v6 = vpack.c.bf16 %v1295_v4, %v1291_v1  ;;  %2070 = vmatprep.subr.bf16.mxu1 %v2227_v63 }
 0x18c   : > { %1352 = vmatprep.subr.bf16.mxu0 %v1299_v6 }
 0x18d   : > { %1353 = vmatpush1.bf16.msra.mxu0 %v1298_v3  ;;  %2071 = vmatpush3.bf16.msra.mxu1 %v2228_v5 }
 0x18e   : > { %2072 = vmatprep.subr.bf16.mxu1 %v2229_v7  ;;  %v2244_v7 = vld [vmem:[%s2742_s9 + $0x8] sm:$0xff]  }
 0x190   : > { %977 = vmatmul.mubr.bf16.gmra.mrb[4].mxu1 %v2214_v8  ;;  %2010 = vmatmul.mubr.msk.bf16.vlgmr.msra.gmra.mrb[68].mxu0 %vm1251_vm2, %v2221_v9 }
 0x191   : > { %986 = vmatprep.mubr.bf16.mxu1 %v2215_v10  ;;  %1394 = vmatprep.mubr.bf16.mxu0 %v2316_v0 }
 0x192   : > { %2073 = vmatpush3.bf16.msra.mxu1 %v2230_v11 }
 0x193   : > { %2074 = vmatprep.subr.bf16.mxu1 %v2231_v12  ;;  %v2245_v12 = vld [vmem:[%s2742_s9 + $0x50] sm:$0xff]  }
 0x196   : > { %2075 = vmatpush3.bf16.msra.mxu1 %v2232_v13 }
 0x197   : > { %2076 = vmatprep.subr.bf16.mxu1 %v2233_v14 }
 0x198   : > { %987 = vmatmul.mubr.bf16.gmra.mrb[8].mxu1 %v2217_v15  ;;  %2011 = vmatmul.mubr.msk.bf16.gmra.mrb[72].mxu0 %vm1251_vm2, %v2222_v16 }
 0x199   : > { %996 = vmatprep.mubr.bf16.mxu1 %v2218_v17  ;;  %1404 = vmatprep.mubr.bf16.mxu0 %v2316_v0 }
 0x19a   : > { %2077 = vmatpush3.bf16.msra.mxu1 %v2234_v18 }
 0x19b   : > { %2078 = vmatprep.subr.bf16.mxu1 %v2235_v19 }
 0x19e   : > { %2079 = vmatpush3.bf16.msra.mxu1 %v2236_v20 }
 0x19f   : > { %2080 = vmatprep.subr.bf16.mxu1 %v2237_v24 }
 0x1a0   : > { %997 = vmatmul.mubr.bf16.gmra.mrb[12].mxu1 %v2220_v21  ;;  %2012 = vmatmul.mubr.msk.bf16.gmra.mrb[76].mxu0 %vm1251_vm2, %v2223_v22  ;;  %v2246_v21 = vld [vmem:[%s2742_s9 + $0x10] sm:$0xff]  }
 0x1a1   : > { %1414 = vmatprep.mubr.bf16.mxu0 %v2316_v0  ;;  %v2239_v0 = vld [vmem:[%s2741_s8 + $0x78] sm:$0xff]  }
 0x1a2   : > { %2081 = vmatpush3.bf16.msra.mxu1 %v2238_v25 }
 0x1a3   : > { %2082 = vmatprep.subr.bf16.mxu1 %v2239_v0  ;;  %v2247_v0 = vld [vmem:[%s2742_s9 + $0x58] sm:$0xff]  }
 0x1a6   : > { %2083 = vmatpush3.bf16.msra.mxu1 %v2240_v26 }
 0x1a7   : > { %2108 = vmatprep.subr.bf16.mxu1 %v2241_v27 }
 0x1a8   : > { %2013 = vmatmul.mubr.msk.bf16.gmra.mrb[80].mxu0 %vm1251_vm2, %v2224_v23 }
 0x25b   : > { %v968_v35 = vpop.f32.mrb[0].mxu1 }
 0x25c   : > { %v969_v36 = vadd.f32 %v968_v35, %v2586_v33  ;;  %v970_v37 = vpop.f32.mrb[1].mxu1 }
 0x25d   : > { %v971_v38 = vadd.f32 %v970_v37, %v2588_v34  ;;  %v972_v39 = vpop.f32.mrb[2].mxu1 }
 0x25e   : > { %v973_v41 = vadd.f32 %v972_v39, %v2586_v33  ;;  %v974_v42 = vpop.f32.mrb[3].mxu1  ;;  %v1007_v44 = vmax.f32 %v969_v36, 0.0 }
 0x25f   : > { %v975_v43 = vadd.f32 %v974_v42, %v2588_v34  ;;  %v1008_v47 = vmax.f32 %v971_v38, 0.0 }
 0x260   : > { %v1009_v45 = vmax.f32 %v973_v41, 0.0 }
 0x261   : > { %v1010_v48 = vmax.f32 %v975_v43, 0.0 }
 0x262   : > { %v1023_v50 = vpack.c.bf16 %v1009_v45, %v1007_v44  ;;  %v2249_v45 = vld [vmem:[%s2742_s9 + $0x60] sm:$0xff]  }
 0x263   : > { %v1024_v51 = vpack.c.bf16 %v1010_v48, %v1008_v47  ;;  %v978_v52 = vpop.f32.mrb[4].mxu1  ;;  %v1386_v54 = vpop.f32.mrb[68].mxu0 }
 0x264   : > { %v979_v55 = vadd.f32 %v978_v52, %v2586_v33  ;;  %v980_v56 = vpop.f32.mrb[5].mxu1  ;;  %v1387_v58 = vadd.f32 %v1386_v54, %v2597_v46  ;;  %v1388_v59 = vpop.f32.mrb[69].mxu0 }
 0x265   : > { %v981_v60 = vadd.f32 %v980_v56, %v2588_v34  ;;  %v982_v61 = vpop.f32.mrb[6].mxu1  ;;  %1191 = vmatprep.mubr.bf16.mxu1 %v1024_v51  ;;  %v1389_v62 = vadd.f32 %v1388_v59, %v2599_v49  ;;  %v1390_v63 = vpop.f32.mrb[70].mxu0  ;;  %v2250_v56 = vld [vmem:[%s2742_s9 + $0x20] sm:$0xff]  }
 0x266   : > { %v983_v1 = vadd.f32 %v982_v61, %v2586_v33  ;;  %v984_v2 = vpop.f32.mrb[7].mxu1  ;;  %1192 = vmatmul.mubr.bf16.vlgmr.msra.gmra.mrb[16].mxu1 %v1023_v50  ;;  %v1425_v3 = vmax.f32 %v1387_v58, 0.0  ;;  %v1391_v4 = vadd.f32 %v1390_v63, %v2597_v46  ;;  %v1392_v5 = vpop.f32.mrb[71].mxu0  ;;  %v1011_v10 = vmax.f32 %v979_v55, 0.0  ;;  %v2251_v61 = vld [vmem:[%s2742_s9 + $0x68] sm:$0xff]  }
 0x267   : > { %v985_v6 = vadd.f32 %v984_v2, %v2588_v34  ;;  %2109 = vmatpush3.bf16.msra.mxu1 %v2242_v53  ;;  %v1426_v8 = vmax.f32 %v1389_v62, 0.0  ;;  %v1393_v9 = vadd.f32 %v1392_v5, %v2599_v49  ;;  %v1012_v14 = vmax.f32 %v981_v60, 0.0 }
 0x268   : > { %v1013_v11 = vmax.f32 %v983_v1, 0.0  ;;  %2110 = vmatprep.subr.bf16.mxu1 %v2243_v57  ;;  %v1427_v13 = vmax.f32 %v1391_v4, 0.0 }
 0x269   : > { %v1014_v15 = vmax.f32 %v985_v6, 0.0  ;;  %v1428_v16 = vmax.f32 %v1393_v9, 0.0 }
 0x26a   : > { %v1025_v17 = vpack.c.bf16 %v1013_v11, %v1011_v10  ;;  %v2621_v18 = vpack.c.bf16 %v1427_v13, %v1425_v3  ;;  %v2252_v11 = vld [vmem:[%s2742_s9 + $0x28] sm:$0xff]  }
 0x26b   : > { %v1026_v19 = vpack.c.bf16 %v1014_v15, %v1012_v14  ;;  %2111 = vmatpush3.bf16.msra.mxu1 %v2244_v7  ;;  %v988_v20 = vpop.f32.mrb[8].mxu1  ;;  %v2626_v22 = vpack.c.bf16 %v1428_v16, %v1426_v8  ;;  %v1396_v23 = vpop.f32.mrb[72].mxu0 }
 0x26c   : > { %v989_v24 = vadd.f32 %v988_v20, %v2586_v33  ;;  %v990_v25 = vpop.f32.mrb[9].mxu1  ;;  %2112 = vmatprep.subr.bf16.mxu1 %v2245_v12  ;;  %v1397_v26 = vadd.f32 %v1396_v23, %v2597_v46  ;;  %v1398_v27 = vpop.f32.mrb[73].mxu0 }
 0x26d   : > { %v991_v28 = vadd.f32 %v990_v25, %v2588_v34  ;;  %v992_v29 = vpop.f32.mrb[10].mxu1  ;;  %1199 = vmatprep.mubr.bf16.mxu1 %v1026_v19  ;;  %v1399_v30 = vadd.f32 %v1398_v27, %v2599_v49  ;;  %v1400_v31 = vpop.f32.mrb[74].mxu0 }
 0x26e   : > { %v993_v32 = vadd.f32 %v992_v29, %v2586_v33  ;;  %v994_v35 = vpop.f32.mrb[11].mxu1  ;;  %1200 = vmatmul.mubr.bf16.gmra.mrb[20].mxu1 %v1025_v17  ;;  %v1429_v36 = vmax.f32 %v1397_v26, 0.0  ;;  %v1401_v37 = vadd.f32 %v1400_v31, %v2597_v46  ;;  %v1402_v38 = vpop.f32.mrb[75].mxu0  ;;  %v1015_v43 = vmax.f32 %v989_v24, 0.0  ;;  %v2254_v24 = vld [vmem:[%s2742_s9 + $0x30] sm:$0xff]   ;;  %v2255_v26 = vld [vmem:[%s2742_s9 + $0x78] sm:$0xff]  }
 0x26f   : > { %v995_v39 = vadd.f32 %v994_v35, %v2588_v34  ;;  %2113 = vmatpush3.bf16.msra.mxu1 %v2246_v21  ;;  %v1430_v41 = vmax.f32 %v1399_v30, 0.0  ;;  %v1403_v42 = vadd.f32 %v1402_v38, %v2599_v49  ;;  %v1016_v48 = vmax.f32 %v991_v28, 0.0 }
 0x270   : > { %v1017_v44 = vmax.f32 %v993_v32, 0.0  ;;  %2114 = vmatprep.subr.bf16.mxu1 %v2247_v0  ;;  %v1431_v47 = vmax.f32 %v1401_v37, 0.0 }
 0x271   : > { %v1018_v50 = vmax.f32 %v995_v39, 0.0  ;;  %v1432_v51 = vmax.f32 %v1403_v42, 0.0 }
 0x272   : > { %v1027_v52 = vpack.c.bf16 %v1017_v44, %v1015_v43  ;;  %v2645_v53 = vpack.c.bf16 %v1431_v47, %v1429_v36  ;;  %v2256_v36 = vld [vmem:[%s2742_s9 + $0x38] sm:$0xff]  }
 0x273   : > { %v1028_v54 = vpack.c.bf16 %v1018_v50, %v1016_v48  ;;  %2115 = vmatpush3.bf16.msra.mxu1 %v2248_v40  ;;  %v998_v55 = vpop.f32.mrb[12].mxu1  ;;  %v1444_v57 = vpack.c.bf16 %v1432_v51, %v1430_v41  ;;  %v1406_v58 = vpop.f32.mrb[76].mxu0 }
 0x274   : > { %v999_v59 = vadd.f32 %v998_v55, %v2586_v33  ;;  %v1000_v60 = vpop.f32.mrb[13].mxu1  ;;  %2116 = vmatprep.subr.bf16.mxu1 %v2249_v45  ;;  %v1407_v62 = vadd.f32 %v1406_v58, %v2597_v46  ;;  %v1408_v63 = vpop.f32.mrb[77].mxu0 }
 0x275   : > { %v1001_v1 = vadd.f32 %v1000_v60, %v2588_v34  ;;  %v1002_v2 = vpop.f32.mrb[14].mxu1  ;;  %1207 = vmatprep.mubr.bf16.mxu1 %v1028_v54  ;;  %v1409_v3 = vadd.f32 %v1408_v63, %v2599_v49  ;;  %v1410_v4 = vpop.f32.mrb[78].mxu0 }
 0x276   : > { %v1003_v5 = vadd.f32 %v1002_v2, %v2586_v33  ;;  %v1004_v6 = vpop.f32.mrb[15].mxu1  ;;  %1208 = vmatmul.mubr.bf16.gmra.mrb[24].mxu1 %v1027_v52  ;;  %v1433_v7 = vmax.f32 %v1407_v62, 0.0  ;;  %v1411_v8 = vadd.f32 %v1410_v4, %v2597_v46  ;;  %v1412_v9 = vpop.f32.mrb[79].mxu0  ;;  %v1019_v14 = vmax.f32 %v999_v59, 0.0  ;;  %v2253_v33 = vld [vmem:[%s2742_s9 + $0x70] sm:$0xff]  }
 0x277   : > { %v1005_v10 = vadd.f32 %v1004_v6, %v2588_v34  ;;  %2117 = vmatpush3.bf16.msra.mxu1 %v2250_v56  ;;  %v1434_v12 = vmax.f32 %v1409_v3, 0.0  ;;  %v1413_v13 = vadd.f32 %v1412_v9, %v2599_v49  ;;  %v1020_v17 = vmax.f32 %v1001_v1, 0.0 }
 0x278   : > { %v1021_v15 = vmax.f32 %v1003_v5, 0.0  ;;  %2118 = vmatprep.subr.bf16.mxu1 %v2251_v61  ;;  %v1435_v16 = vmax.f32 %v1411_v8, 0.0 }
 0x279   : > { %v1022_v19 = vmax.f32 %v1005_v10, 0.0  ;;  %v1436_v20 = vmax.f32 %v1413_v13, 0.0 }
 0x27a   : > { %v1029_v34 = vpack.c.bf16 %v1021_v15, %v1019_v14  ;;  %v1445_v21 = vpack.c.bf16 %v1435_v16, %v1433_v7  ;;  %v2030_v7 = vld [vmem:[%s2743_s10] ss:$0 sm:$0xff] }
 0x27b   : > { %v1030_v23 = vpack.c.bf16 %v1022_v19, %v1020_v17  ;;  %2119 = vmatpush3.bf16.msra.mxu1 %v2252_v11  ;;  %v1446_v25 = vpack.c.bf16 %v1436_v20, %v1434_v12  ;;  %v1416_v0 = vpop.f32.mrb[80].mxu0 }
 0x27c   : > { %2120 = vmatprep.subr.bf16.mxu1 %v2253_v33  ;;  %v1417_v27 = vadd.f32 %v1416_v0, %v2597_v46  ;;  %v1418_v28 = vpop.f32.mrb[81].mxu0 }
 0x27d   : > { %1215 = vmatprep.mubr.bf16.mxu1 %v1030_v23  ;;  %v1419_v29 = vadd.f32 %v1418_v28, %v2599_v49  ;;  %v1420_v30 = vpop.f32.mrb[82].mxu0 }
 0x27e   : > { %1216 = vmatmul.mubr.bf16.gmra.mrb[28].mxu1 %v1029_v34  ;;  %v1437_v31 = vmax.f32 %v1417_v27, 0.0  ;;  %v1421_v32 = vadd.f32 %v1420_v30, %v2597_v46  ;;  %v1422_v35 = vpop.f32.mrb[83].mxu0 }
 0x27f   : > { %2121 = vmatpush3.bf16.msra.mxu1 %v2254_v24  ;;  %1609 = vmatprep.mubr.bf16.mxu1 %v2626_v22  ;;  %v1438_v37 = vmax.f32 %v1419_v29, 0.0  ;;  %v1423_v38 = vadd.f32 %v1422_v35, %v2599_v49 }
 0x280   : > { %2122 = vmatprep.subr.bf16.mxu1 %v2255_v26  ;;  %v1439_v39 = vmax.f32 %v1421_v32, 0.0 }
 0x281   : > { %v1440_v40 = vmax.f32 %v1423_v38, 0.0 }
 0x282   : > { %v1447_v41 = vpack.c.bf16 %v1439_v39, %v1437_v31 }
 0x283   : > { %2123 = vmatpush3.bf16.msra.mxu1 %v2256_v36  ;;  %v1448_v42 = vpack.c.bf16 %v1440_v40, %v1438_v37 }
 0x286   : > { %1610 = vmatmul.mubr.bf16.vlgmr.msra.gmra.mrb[32].mxu1 %v2621_v18 }
 0x287   : > { %1617 = vmatprep.mubr.bf16.mxu1 %v1444_v57 }
 0x28e   : > { %1618 = vmatmul.mubr.bf16.gmra.mrb[36].mxu1 %v2645_v53 }
 0x28f   : > { %1625 = vmatprep.mubr.bf16.mxu1 %v1446_v25 }
 0x296   : > { %1626 = vmatmul.mubr.bf16.gmra.mrb[40].mxu1 %v1445_v21 }
 0x297   : > { %1633 = vmatprep.mubr.bf16.mxu1 %v1448_v42 }
 0x29e   : > { %1634 = vmatmul.mubr.bf16.gmra.mrb[44].mxu1 %v1447_v41 }
 0x339   : > { %v2084_v46 = vpop.f32.mrb[16].mxu1 }
 0x33a   : > { %v2085_v22 = vpop.f32.mrb[17].mxu1 }
 0x33b   : > { %v2086_v43 = vadd.f32 %v2085_v22, %v2084_v46  ;;  %v2087_v44 = vpop.f32.mrb[18].mxu1 }
 0x33c   : > { %v2088_v49 = vpop.f32.mrb[19].mxu1 }
 0x33d   : > { %v2089_v45 = vadd.f32 %v2088_v49, %v2087_v44 }
 0x341   : > { %v2090_v47 = vpop.f32.mrb[20].mxu1 }
 0x342   : > { %v2091_v48 = vpop.f32.mrb[21].mxu1 }
 0x343   : > { %v2092_v50 = vadd.f32 %v2091_v48, %v2090_v47  ;;  %v2093_v51 = vpop.f32.mrb[22].mxu1 }
 0x344   : > { %v2094_v52 = vpop.f32.mrb[23].mxu1 }
 0x345   : > { %v2095_v54 = vadd.f32 %v2094_v52, %v2093_v51 }
 0x349   : > { %v2096_v18 = vpop.f32.mrb[24].mxu1 }
 0x34a   : > { %v2097_v55 = vpop.f32.mrb[25].mxu1 }
 0x34b   : > { %v2098_v56 = vadd.f32 %v2097_v55, %v2096_v18  ;;  %v2099_v53 = vpop.f32.mrb[26].mxu1 }
 0x34c   : > { %v2100_v57 = vpop.f32.mrb[27].mxu1 }
 0x34d   : > { %v2101_v58 = vadd.f32 %v2100_v57, %v2099_v53 }
 0x351   : > { %v2102_v59 = vpop.f32.mrb[28].mxu1 }
 0x352   : > { %v2103_v60 = vpop.f32.mrb[29].mxu1 }
 0x353   : > { %v2104_v61 = vadd.f32 %v2103_v60, %v2102_v59  ;;  %v2105_v62 = vpop.f32.mrb[30].mxu1 }
 0x354   : > { %v2106_v63 = vpop.f32.mrb[31].mxu1 }
 0x355   : > { %v2107_v1 = vadd.f32 %v2106_v63, %v2105_v62 }
 0x359   : > { %v2124_v2 = vpop.f32.mrb[32].mxu1 }
 0x35a   : > { %v2125_v3 = vpop.f32.mrb[33].mxu1 }
 0x35b   : > { %v2126_v4 = vadd.f32 %v2125_v3, %v2124_v2  ;;  %v2127_v5 = vpop.f32.mrb[34].mxu1 }
 0x35c   : > { %v2128_v6 = vpop.f32.mrb[35].mxu1 }
 0x35d   : > { %v2129_v8 = vadd.f32 %v2128_v6, %v2127_v5  ;;  %v1650_v9 = vadd.f32 %v2126_v4, %v2086_v43 }
 0x35f   : > { %v1651_v10 = vadd.f32 %v2129_v8, %v2089_v45  ;;  %v1681_v11 = vadd.f32 %v2030_v7, %v1650_v9 }
 0x361   : > { %v2130_v12 = vpop.f32.mrb[36].mxu1  ;;  %v1689_v13 = vmax.f32 %v1681_v11, 0.0  ;;  %v1682_v14 = vadd.f32 %v2030_v7, %v1651_v10 }
 0x362   : > { %v2131_v15 = vpop.f32.mrb[37].mxu1 }
 0x363   : > { %v2132_v33 = vadd.f32 %v2131_v15, %v2130_v12  ;;  %v2133_v16 = vpop.f32.mrb[38].mxu1  ;;  %1697 = vxpose.xlu0.b32.start [1/8] (short) %v1689_v13, 128  ;;  %v1690_v34 = vmax.f32 %v1682_v14, 0.0 }
 0x364   : > { %v2134_v17 = vpop.f32.mrb[39].mxu1 }
 0x365   : > { %v1652_v19 = vadd.f32 %v2132_v33, %v2092_v50  ;;  %v2135_v20 = vadd.f32 %v2134_v17, %v2133_v16 }
 0x367   : > { %v1653_v21 = vadd.f32 %v2135_v20, %v2095_v54  ;;  %1698 = vxpose.xlu0.b32.cont [2/8] (short) %v1690_v34, 128  ;;  %v1683_v23 = vadd.f32 %v2030_v7, %v1652_v19 }
 0x369   : > { %v2136_v24 = vpop.f32.mrb[40].mxu1  ;;  %v1691_v25 = vmax.f32 %v1683_v23, 0.0  ;;  %v1684_v0 = vadd.f32 %v2030_v7, %v1653_v21 }
 0x36a   : > { %v2137_v26 = vpop.f32.mrb[41].mxu1 }
 0x36b   : > { %v2138_v27 = vadd.f32 %v2137_v26, %v2136_v24  ;;  %v2139_v28 = vpop.f32.mrb[42].mxu1  ;;  %1699 = vxpose.xlu0.b32.cont [3/8] (short) %v1691_v25, 128  ;;  %v1692_v32 = vmax.f32 %v1684_v0, 0.0 }
 0x36c   : > { %v2140_v29 = vpop.f32.mrb[43].mxu1 }
 0x36d   : > { %v1654_v30 = vadd.f32 %v2138_v27, %v2098_v56  ;;  %v2141_v31 = vadd.f32 %v2140_v29, %v2139_v28 }
 0x36f   : > { %v1655_v35 = vadd.f32 %v2141_v31, %v2101_v58  ;;  %1700 = vxpose.xlu0.b32.cont [4/8] (short) %v1692_v32, 128  ;;  %v1685_v36 = vadd.f32 %v2030_v7, %v1654_v30 }
 0x371   : > { %v2142_v37 = vpop.f32.mrb[44].mxu1  ;;  %v1693_v38 = vmax.f32 %v1685_v36, 0.0  ;;  %v1686_v39 = vadd.f32 %v2030_v7, %v1655_v35 }
 0x372   : > { %v2143_v40 = vpop.f32.mrb[45].mxu1 }
 0x373   : > { %v2144_v41 = vadd.f32 %v2143_v40, %v2142_v37  ;;  %v2145_v42 = vpop.f32.mrb[46].mxu1  ;;  %1701 = vxpose.xlu0.b32.cont [5/8] (short) %v1693_v38, 128  ;;  %v1694_v44 = vmax.f32 %v1686_v39, 0.0 }
 0x374   : > { %v2146_v46 = vpop.f32.mrb[47].mxu1 }
 0x375   : > { %v1656_v22 = vadd.f32 %v2144_v41, %v2104_v61  ;;  %v2147_v43 = vadd.f32 %v2146_v46, %v2145_v42 }
 0x377   : > { %v1657_v49 = vadd.f32 %v2147_v43, %v2107_v1  ;;  %1702 = vxpose.xlu0.b32.cont [6/8] (short) %v1694_v44, 128  ;;  %v1687_v45 = vadd.f32 %v2030_v7, %v1656_v22 }
 0x379   : > { %v1695_v47 = vmax.f32 %v1687_v45, 0.0  ;;  %v1688_v48 = vadd.f32 %v2030_v7, %v1657_v49 }
 0x37b   : > { %1703 = vxpose.xlu0.b32.cont [7/8] (short) %v1695_v47, 128  ;;  %v1696_v50 = vmax.f32 %v1688_v48, 0.0 }
 0x37f   : > { %1704 = vxpose.xlu0.b32.end [8/8] (short) %v1696_v50, 128 }
 0x3e3   : > { %v1713_v51 = vpop.trf.xlu0 }
 0x3e4   : > { %v2052_v52 = vpack.c.bf16 %v1713_v51, %v1713_v51 }
 0x3e6   : > { %1794 = vst.msk [vmem:[%s2690_s30] sm:$0xf] %vm1793_vm3, %v2052_v52 }
 0x3e7   : > { %v1714_v54 = vpop.trf.xlu0 }
 0x3e8   : > { %v2053_v18 = vpack.c.bf16 %v1714_v54, %v1714_v54 }
 0x3ea   : > { %1795 = vst.msk [vmem:[%s2690_s30 + $0x4] sm:$0xf] %vm1793_vm3, %v2053_v18 }
 0x3eb   : > { %v1715_v55 = vpop.trf.xlu0 }
 0x3ec   : > { %v2054_v56 = vpack.c.bf16 %v1715_v55, %v1715_v55 }
 0x3ee   : > { %1796 = vst.msk [vmem:[%s2690_s30 + $0x8] sm:$0xf] %vm1793_vm3, %v2054_v56 }
 0x3ef   : > { %v1716_v53 = vpop.trf.xlu0 }
 0x3f0   : > { %v2055_v57 = vpack.c.bf16 %v1716_v53, %v1716_v53 }
 0x3f2   : > { %1797 = vst.msk [vmem:[%s2690_s30 + $0xc] sm:$0xf] %vm1793_vm3, %v2055_v57 }
 0x3f3   : > { %v1717_v58 = vpop.trf.xlu0 }
 0x3f4   : > { %v2056_v59 = vpack.c.bf16 %v1717_v58, %v1717_v58 }
 0x3f6   : > { %1798 = vst.msk [vmem:[%s2690_s30 + $0x10] sm:$0xf] %vm1793_vm3, %v2056_v59 }
 0x3f7   : > { %v1718_v60 = vpop.trf.xlu0 }
 0x3f8   : > { %v2057_v61 = vpack.c.bf16 %v1718_v60, %v1718_v60 }
 0x3fa   : > { %1799 = vst.msk [vmem:[%s2690_s30 + $0x14] sm:$0xf] %vm1793_vm3, %v2057_v61 }
 0x3fb   : > { %v1719_v62 = vpop.trf.xlu0 }
 0x3fc   : > { %v2058_v63 = vpack.c.bf16 %v1719_v62, %v1719_v62 }
 0x3fe   : > { %1800 = vst.msk [vmem:[%s2690_s30 + $0x18] sm:$0xf] %vm1793_vm3, %v2058_v63 }
 0x3ff   : > { %v1720_v1 = vpop.trf.xlu0 }
 0x400   : > { %v2059_v2 = vpack.c.bf16 %v1720_v1, %v1720_v1 }
 0x402   : > { %1801 = vst.msk [vmem:[%s2690_s30 + $0x1c] sm:$0xf] %vm1793_vm3, %v2059_v2 }
 0x403   : > { %v1721_v3 = vpop.trf.xlu0 }
 0x404   : > { %v2060_v4 = vpack.c.bf16 %v1721_v3, %v1721_v3 }
 0x406   : > { %1802 = vst.msk [vmem:[%s2690_s30 + $0x20] sm:$0xf] %vm1793_vm3, %v2060_v4 }
 0x407   : > { %v1722_v5 = vpop.trf.xlu0 }
 0x408   : > { %v2061_v6 = vpack.c.bf16 %v1722_v5, %v1722_v5 }
 0x40a   : > { %1803 = vst.msk [vmem:[%s2690_s30 + $0x24] sm:$0xf] %vm1793_vm3, %v2061_v6 }
 0x40b   : > { %v1723_v7 = vpop.trf.xlu0 }
 0x40c   : > { %v2062_v8 = vpack.c.bf16 %v1723_v7, %v1723_v7 }
 0x40e   : > { %1804 = vst.msk [vmem:[%s2690_s30 + $0x28] sm:$0xf] %vm1793_vm3, %v2062_v8 }
 0x40f   : > { %v1724_v9 = vpop.trf.xlu0 }
 0x410   : > { %v2063_v10 = vpack.c.bf16 %v1724_v9, %v1724_v9 }
 0x412   : > { %1805 = vst.msk [vmem:[%s2690_s30 + $0x2c] sm:$0xf] %vm1793_vm3, %v2063_v10 }
 0x413   : > { %v1725_v11 = vpop.trf.xlu0 }
 0x414   : > { %v2064_v12 = vpack.c.bf16 %v1725_v11, %v1725_v11 }
 0x416   : > { %1806 = vst.msk [vmem:[%s2690_s30 + $0x30] sm:$0xf] %vm1793_vm3, %v2064_v12 }
 0x417   : > { %v1726_v13 = vpop.trf.xlu0 }
 0x418   : > { %v2065_v14 = vpack.c.bf16 %v1726_v13, %v1726_v13 }
 0x41a   : > { %1807 = vst.msk [vmem:[%s2690_s30 + $0x34] sm:$0xf] %vm1793_vm3, %v2065_v14 }
 0x41b   : > { %v1727_v15 = vpop.trf.xlu0 }
 0x41c   : > { %v2066_v33 = vpack.c.bf16 %v1727_v15, %v1727_v15 }
 0x41e   : > { %1808 = vst.msk [vmem:[%s2690_s30 + $0x38] sm:$0xf] %vm1793_vm3, %v2066_v33 }
 0x41f   : > { %v1728_v16 = vpop.trf.xlu0 }
 0x420   : > { %v2067_v17 = vpack.c.bf16 %v1728_v16, %v1728_v16 }
 0x422   : > { %1809 = vst.msk [vmem:[%s2690_s30 + $0x3c] sm:$0xf] %vm1793_vm3, %v2067_v17 }
 0x423 PF: > { %s22_s19 = sadd.s32 1, %s2311_s19   ;;  %s2753_s17 = smov %s2307_s18 }
 0x424   : > { %p19_p4 = scmp.ge.s32.totalorder %s22_s19, 4   ;;  %s2754_s18 = smov %s2756_s21 }
 0x426   :  { %21 = sbr.rel (!%p19_p4) target bundleno = 2 (0x2), region = 106 }
 0x42d   :  { %1837 = vsyncpa [#allocation4], 1 }
 0x42e   :  { %1839 = vsyncpa [#allocation4 + $0x1], 1 }

</bundles_post_ra>
